<compile_context>
chip_gen: v6e
topology: v6e:2x2x1
jax: 0.10.0
libtpu: 0.0.40
codegen_flags: <defaults>
</compile_context>

<pallas_src>
import jax
import jax.numpy as jnp
from jax.experimental import pallas as pl
from jax.experimental.pallas import tpu as pltpu


def _round_up(x, m):
    return ((x + m - 1) // m) * m


def _vmem_budget_bytes():
    """Generation-aware VMEM budget: ~96 MiB on v5e/v6e, ~48 MiB on v7x."""
    cap = None
    try:
        cap = getattr(pltpu.get_tpu_info(), "vmem_capacity_bytes", None)
    except Exception:
        cap = None
    if not cap:
        cap = 64 * 1024 * 1024          # conservative fallback: v7x per-TC VMEM
    return int(min(cap * 3 // 4, 100 * 1024 * 1024))


def _fit_row_tile(n_pad, resident_bytes, per_row_bytes, budget_bytes):
    """Largest row tile (multiple of 128, dividing n_pad) fitting the budget."""
    avail = budget_bytes - resident_bytes
    if avail <= 0:
        # Best effort; see TODO on K-tiling for graphs whose resident set alone
        # exceeds the budget.
        cap = 128
    else:
        cap = max(128, (avail // per_row_bytes) // 128 * 128)
    tm = min(n_pad, cap)
    while tm > 128 and n_pad % tm != 0:
        tm -= 128
    if n_pad % tm != 0:
        tm = 128
    return tm


# ---------------------------------------------------------------------------
# Stage 1: fts = seq @ W^T      (nn.Linear(in_ft, out_ft, bias=False))
# ---------------------------------------------------------------------------
def linear_kernel(seq_ref, w_ref, fts_ref):
    # seq_ref: (TL, Fin_pad)   streamed row tile
    # w_ref:   (Fin_pad, Fout_pad)  resident weight (pre-transposed)
    # fts_ref: (TL, Fout_pad)  output tile in compute_dtype (f32 accumulate)
    fts_ref[...] = jnp.dot(
        seq_ref[...], w_ref[...], preferred_element_type=jnp.float32
    ).astype(fts_ref.dtype)


# ---------------------------------------------------------------------------
# Stage 2: out = PReLU(adj @ fts + bias)
# ---------------------------------------------------------------------------
def aggregate_kernel(alpha_ref, adj_ref, fts_ref, b_ref, out_ref):
    # alpha_ref: (1,) PReLU slope in SMEM
    # adj_ref:   (TM, Npad)        streamed adjacency row tile (HBM-bound stream)
    # fts_ref:   (Npad, Fout_pad)  resident per batch element
    # b_ref:     (1, Fout_pad)     resident bias (f32)
    # out_ref:   (TM, Fout_pad)    output row tile (f32)
    out = jnp.dot(adj_ref[...], fts_ref[...], preferred_element_type=jnp.float32)
    out = out + b_ref[...]
    alpha = alpha_ref[0]
    out_ref[...] = jnp.where(out >= 0.0, out, alpha * out)


def gcn_forward(seq, adj, w_t, bias, alpha, sparse=True,
                compute_dtype=jnp.bfloat16):
    """seq: (B, N, Fin); adj: (N, N) if sparse (B must be 1) else (B, N, N).

    w_t is the linear weight stored pre-transposed as (Fin, Fout); bias (Fout,).
    compute_dtype: dtype of the matmul operands (bf16 default — the kernel is
    HBM-bound on the adjacency stream, so bf16 halves the dominant traffic);
    accumulation and the bias/PReLU epilogue are always float32.
    """
    if sparse:
        # torch path: spmm(adj, squeeze(seq_fts, 0)) with B == 1 (dense stand-in).
        assert seq.shape[0] == 1, "sparse path mirrors torch.spmm with B == 1"
        adj_b = adj[None, :, :] if adj.ndim == 2 else adj
    else:
        adj_b = adj

    B, N, Fin = seq.shape
    Fout = w_t.shape[1]
    compute_dtype = jnp.dtype(compute_dtype)
    itemsize = compute_dtype.itemsize

    # Lane-dense padding: last two dims to multiples of 128 so every MXU pass
    # and vector store is unmasked.  cast + pad fuse into one XLA pass; when N
    # is already 128-aligned there is no pad op at all.
    n_pad = _round_up(N, 128)
    fin_pad = _round_up(Fin, 128)
    fout_pad = _round_up(Fout, 128)

    seq_p = jnp.pad(seq.astype(compute_dtype),
                    ((0, 0), (0, n_pad - N), (0, fin_pad - Fin)))
    adj_p = jnp.pad(adj_b.astype(compute_dtype),
                    ((0, 0), (0, n_pad - N), (0, n_pad - N)))
    w_p = jnp.pad(w_t.astype(compute_dtype),
                  ((0, fin_pad - Fin), (0, fout_pad - Fout)))
    bias_p = jnp.pad(bias.astype(jnp.float32),
                     (0, fout_pad - Fout)).reshape(1, fout_pad)
    alpha1d = jnp.asarray([alpha], dtype=jnp.float32)

    budget = _vmem_budget_bytes()

    # --- Stage 1: fts = seq @ W^T (compute_dtype output, f32 accumulate) ----
    tl = _fit_row_tile(
        n_pad,
        resident_bytes=2 * fin_pad * fout_pad * itemsize,          # W (2 bufs)
        per_row_bytes=2 * (fin_pad + fout_pad) * itemsize,         # seq + fts tiles
        budget_bytes=budget)
    fts = pl.pallas_call(
        linear_kernel,
        out_shape=jax.ShapeDtypeStruct((B, n_pad, fout_pad), compute_dtype),
        grid=(B, n_pad // tl),
        in_specs=[
            pl.BlockSpec((None, tl, fin_pad), lambda b, r: (b, r, 0)),
            pl.BlockSpec((fin_pad, fout_pad), lambda b, r: (0, 0)),
        ],
        out_specs=pl.BlockSpec((None, tl, fout_pad), lambda b, r: (b, r, 0)),
        compiler_params=pltpu.CompilerParams(
            dimension_semantics=("parallel", "parallel"),
            vmem_limit_bytes=budget,
        ),
    )(seq_p, w_p)

    # --- Stage 2: out = PReLU(adj @ fts + bias) ------------------------------
    # No scratch carry -> both grid axes "parallel" (v7x's second TC is used
    # for the B == 1 sparse path).  adj tiles stream (double-buffered) against
    # a resident fts slab; tile size chosen against the same VMEM budget the
    # compiler is given.
    tm = _fit_row_tile(
        n_pad,
        resident_bytes=2 * n_pad * fout_pad * itemsize + 2 * fout_pad * 4,
        per_row_bytes=2 * (n_pad * itemsize + fout_pad * 4),
        budget_bytes=budget)
    out_p = pl.pallas_call(
        aggregate_kernel,
        out_shape=jax.ShapeDtypeStruct((B, n_pad, fout_pad), jnp.float32),
        grid=(B, n_pad // tm),
        in_specs=[
            # PReLU slope: scalar in SMEM.
            pl.BlockSpec(memory_space=pltpu.MemorySpace.SMEM),
            # adj: streamed (TM, Npad) row tile, double-buffered by Pallas.
            pl.BlockSpec((None, tm, n_pad), lambda b, r: (b, r, 0)),
            # fts: resident (Npad, Fout_pad) per batch element.
            pl.BlockSpec((None, n_pad, fout_pad), lambda b, r: (b, 0, 0)),
            # bias: constant index_map -> stays VMEM-resident.
            pl.BlockSpec((1, fout_pad), lambda b, r: (0, 0)),
        ],
        out_specs=pl.BlockSpec((None, tm, fout_pad), lambda b, r: (b, r, 0)),
        compiler_params=pltpu.CompilerParams(
            dimension_semantics=("parallel", "parallel"),
            vmem_limit_bytes=budget,
        ),
    )(alpha1d, adj_p, fts, bias_p)

    return out_p[:, :N, :Fout]


def gcn_reference(seq, adj, w_t, bias, alpha, sparse=True):
    seq_fts = jnp.einsum("bnf,fo->bno", seq, w_t)
    if sparse:
        adj2 = adj if adj.ndim == 2 else adj[0]
        out = (adj2 @ seq_fts[0])[None]
    else:
        out = jnp.einsum("bnm,bmo->bno", adj, seq_fts)
    out = out + bias
    return jnp.where(out >= 0.0, out, alpha * out)


if __name__ == "__main__":
    # Small shapes implied by the module: 1 graph, N nodes, in_ft -> out_ft.
    B, N, Fin, Fout = 1, 8, 16, 32

    key = jax.random.PRNGKey(0)
    k_seq, k_adj, k_w, k_seq2, k_adj2 = jax.random.split(key, 5)

    seq = jax.random.normal(k_seq, (B, N, Fin), dtype=jnp.float32)

    # Symmetric row-normalized adjacency (dense stand-in for the sparse adj).
    a = jax.random.uniform(k_adj, (N, N), dtype=jnp.float32)
    adj = (a + a.T) * 0.5 + jnp.eye(N, dtype=jnp.float32)
    adj = adj / jnp.sum(adj, axis=-1, keepdims=True)

    # nn.Linear(in_ft, out_ft, bias=False) with xavier_uniform_ init,
    # stored transposed as (Fin, Fout) so the kernel does seq @ W^T directly.
    bound = (6.0 / (Fin + Fout)) ** 0.5
    w_t = jax.random.uniform(k_w, (Fin, Fout), dtype=jnp.float32,
                             minval=-bound, maxval=bound)

    bias = jnp.zeros((Fout,), dtype=jnp.float32)   # self.bias.data.fill_(0.0)
    alpha = 0.25                                   # nn.PReLU() default slope

    ref = gcn_reference(seq, adj, w_t, bias, alpha, sparse=True)

    # 1) sparse path (B == 1), explicit float32 compute — tight check.
    out_f32 = jax.block_until_ready(
        gcn_forward(seq, adj, w_t, bias, alpha, sparse=True,
                    compute_dtype=jnp.float32))
    assert out_f32.shape == (B, N, Fout)
    assert jnp.allclose(out_f32, ref, atol=1e-4, rtol=1e-4)

    # 2) default bf16 operand path (f32 accumulate / epilogue): the HBM-bound
    #    adjacency stream is halved.  Loose tolerance vs the f32 reference.
    out_bf16 = jax.block_until_ready(
        gcn_forward(seq, adj, w_t, bias, alpha, sparse=True))
    assert out_bf16.shape == (B, N, Fout)
    assert jnp.allclose(out_bf16, ref, atol=5e-2, rtol=5e-2)

    # 3) dense path (torch.bmm), B = 2, float32 compute — exercises batch axis.
    B2 = 2
    seq2 = jax.random.normal(k_seq2, (B2, N, Fin), dtype=jnp.float32)
    a2 = jax.random.uniform(k_adj2, (B2, N, N), dtype=jnp.float32)
    adj2 = (a2 + jnp.swapaxes(a2, -1, -2)) * 0.5 + jnp.eye(N, dtype=jnp.float32)
    adj2 = adj2 / jnp.sum(adj2, axis=-1, keepdims=True)
    out2 = jax.block_until_ready(
        gcn_forward(seq2, adj2, w_t, bias, alpha, sparse=False,
                    compute_dtype=jnp.float32))
    ref2 = gcn_reference(seq2, adj2, w_t, bias, alpha, sparse=False)
    assert out2.shape == (B2, N, Fout)
    assert jnp.allclose(out2, ref2, atol=1e-4, rtol=1e-4)

    print("KERNEL_OK")
</pallas_src>

<mosaic_0001>
module attributes {stable_mosaic.version = 11 : i64} {
  func.func @linear_kernel(%arg0: i32, %arg1: i32, %arg2: memref<1x128x128xf32, #tpu.memory_space<vmem>>, %arg3: memref<128x128xf32, #tpu.memory_space<vmem>>, %arg4: memref<1x128x128xf32, #tpu.memory_space<vmem>>) attributes {dimension_semantics = [#tpu.dimension_semantics<parallel>, #tpu.dimension_semantics<parallel>], iteration_bounds = array<i64: 1, 1>, scalar_prefetch = 0 : i64, scratch_operands = 0 : i64, tpu.core_type = #tpu.core_type<tc>, window_params = [{transform_indices = @transform_0, window_bounds = array<i64: 1, 128, 128>}, {pipeline_mode = #tpu.pipeline_mode<synchronous>, transform_indices = @transform_1, window_bounds = array<i64: 128, 128>}, {transform_indices = @transform_2, window_bounds = array<i64: 1, 128, 128>}]} {
    %c0 = arith.constant 0 : index
    %c0_0 = arith.constant 0 : index
    %c0_1 = arith.constant 0 : index
    %0 = vector.load %arg2[%c0, %c0_0, %c0_1] : memref<1x128x128xf32, #tpu.memory_space<vmem>>, vector<1x128x128xf32>
    %1 = vector.shape_cast %0 : vector<1x128x128xf32> to vector<128x128xf32>
    %c0_2 = arith.constant 0 : index
    %c0_3 = arith.constant 0 : index
    %2 = vector.load %arg3[%c0_2, %c0_3] : memref<128x128xf32, #tpu.memory_space<vmem>>, vector<128x128xf32>
    %cst = arith.constant dense<0.000000e+00> : vector<128x128xf32>
    %3 = tpu.matmul %1, %2, %cst {dimension_numbers = #tpu.dot_dimension_numbers<[1], [0], [0], [1], [0, 0, 1, 1], [], []>} : vector<128x128xf32>, vector<128x128xf32>, vector<128x128xf32> -> vector<128x128xf32>
    %c0_4 = arith.constant 0 : index
    %c0_5 = arith.constant 0 : index
    %c0_6 = arith.constant 0 : index
    %4 = vector.load %arg4[%c0_4, %c0_5, %c0_6] : memref<1x128x128xf32, #tpu.memory_space<vmem>>, vector<1x128x128xf32>
    %5 = vector.shape_cast %4 : vector<1x128x128xf32> to vector<128x128xf32>
    %6 = vector.shape_cast %3 : vector<128x128xf32> to vector<1x128x128xf32>
    tpu.vector_store %arg4[%c0_4, %c0_5, %c0_6], %6 {strides = array<i32>} : memref<1x128x128xf32, #tpu.memory_space<vmem>>, vector<1x128x128xf32>,
    return
  }
  func.func @transform_0(%arg0: i32, %arg1: i32) -> (i32, i32, i32) {
    %c0_i32 = arith.constant 0 : i32
    %c0_i32_0 = arith.constant 0 : i32
    return %arg0, %arg1, %c0_i32 : i32, i32, i32
  }
  func.func @transform_1(%arg0: i32, %arg1: i32) -> (i32, i32) {
    %c0_i32 = arith.constant 0 : i32
    %c0_i32_0 = arith.constant 0 : i32
    %c0_i32_1 = arith.constant 0 : i32
    return %c0_i32, %c0_i32_0 : i32, i32
  }
  func.func @transform_2(%arg0: i32, %arg1: i32) -> (i32, i32, i32) {
    %c0_i32 = arith.constant 0 : i32
    %c0_i32_0 = arith.constant 0 : i32
    return %arg0, %arg1, %c0_i32 : i32, i32, i32
  }
}

</mosaic_0001>

<bundles_post_ra>
// kernel: tpu_custom_call.1
= control target key start
LH: loop header
LB: loop body
LE: loop exit
PB: predicated region body
PF: predicated region fallthrough
CT: control target
= control target key end

     0   :  { %7 = vsyncpa [#allocation3], 0  ;;  %s480_s0 = inlined_call_operand.hbm [shape: f32[1,128,128], index: 0, kind: input, shape index: {}]   ;;  %s481_s1 = inlined_call_operand.hbm [shape: f32[128,128], index: 1, kind: input, shape index: {}]   ;;  %s482_s2 = inlined_call_operand.hbm [shape: f32[1,128,128], index: 2, kind: output, shape index: {}]  }
   0x1   :  { %8 = vsyncpa [#allocation6], 0 }
   0x2   :  { %9 = vsyncpa [#allocation4], 0  ;;  %s442_s9 = smov [#allocation2]  }
   0x3   :  { %s15_s10 = sshll.u32 %s442_s9, 4  ;;  %s16_s10 = int_to_ptr.vmem [resolvable:$true] %s15_s10 }
   0x4   :  { %s384_s11 = scalar_lea.vmem %s16_s10, 2048  ;;  %p389_p1 = scmp.lt.s32.totalorder %s16_s10, %s16_s10 }
   0x5   :  { %p385_p0 = scmp.ne.s32.totalorder %s16_s10, %s384_s11  ;;  %p390_p2 = scmp.lt.s32.totalorder %s384_s11, %s384_s11 }
   0x7   :  { %p391_p3 = por %p390_p2, %p389_p1 }
   0x9   :  { %p392_p4 = pnand %p391_p3, %p385_p0 }
   0xb   :  { %395 = shalt.err (!%p392_p4)
}
   0xc   :  { %s443_s12 = smov 128   ;;  %s444_s13 = smov 8  }
   0xd   :  { %21 = dma.hbm_to_vmem [thread:$0]  %s480_s0, 2048, %s16_s10, [#allocation3], %s443_s12, %s443_s12, %s444_s13  }
   0xe   :  { %s445_s16 = smov [#allocation5]  }
   0xf   :  { %s27_s17 = sshll.u32 %s445_s16, 4  ;;  %s28_s17 = int_to_ptr.vmem [resolvable:$true] %s27_s17 }
  0x10   :  { %s404_s18 = scalar_lea.vmem %s28_s17, 2048  ;;  %p409_p6 = scmp.lt.s32.totalorder %s28_s17, %s28_s17 }
  0x11   :  { %p405_p5 = scmp.ne.s32.totalorder %s28_s17, %s404_s18  ;;  %p410_p7 = scmp.lt.s32.totalorder %s404_s18, %s404_s18 }
  0x13   :  { %p411_p8 = por %p410_p7, %p409_p6 }
  0x15   :  { %p412_p9 = pnand %p411_p8, %p405_p5 }
  0x17   :  { %415 = shalt.err (!%p412_p9)
}
  0x18   :  { %33 = dma.hbm_to_vmem [thread:$0]  %s481_s1, 2048, %s28_s17, [#allocation6], %s443_s12, %s443_s12, %s444_s13  }
  0x19   :  { %436 = dma.done.wait [#allocation3], 2048  }
  0x1a   :  { %437 = vsyncadd [#allocation3], 4294965248 }
  0x1b   :  { %438 = dma.done.wait [#allocation6], 2048  }
  0x1c   :  { %439 = vsyncadd [#allocation6], 4294965248  ;;  %v71_v0 = vld [vmem:[#allocation5 + $0x78] sm:$0xff]  ;;  %v70_v1 = vld [vmem:[#allocation5 + $0x70] sm:$0xff]  ;;  %s446_s0 = smov [#allocation7]  }
  0x1d   :  { %283 = vmatprep.subr.mxu0 %v71_v0  ;;  %339 = vmatprep.subr.mxu1 %v71_v0  ;;  %v69_v2 = vld [vmem:[#allocation5 + $0x68] sm:$0xff]  ;;  %v68_v3 = vld [vmem:[#allocation5 + $0x60] sm:$0xff]  ;;  %v67_v4 = vld [vmem:[#allocation5 + $0x58] sm:$0xff]  ;;  %s238_s1 = sshll.u32 %s446_s0, 4  ;;  %s239_s1 = int_to_ptr.vmem [resolvable:$true] %s238_s1 }
  0x1e   :  { %284 = vmatpush3.msra.mxu0 %v71_v0  ;;  %355 = vmatpush3.msra.mxu1 %v71_v0  ;;  %v66_v5 = vld [vmem:[#allocation5 + $0x50] sm:$0xff]  ;;  %v65_v6 = vld [vmem:[#allocation5 + $0x48] sm:$0xff]  ;;  %v64_v7 = vld [vmem:[#allocation5 + $0x40] sm:$0xff]  ;;  %s416_s21 = scalar_lea.vmem %s239_s1, 2048  ;;  %p421_p11 = scmp.lt.s32.totalorder %s239_s1, %s239_s1 }
  0x1f   :  { %285 = vmatprep.subr.mxu0 %v70_v1  ;;  %340 = vmatprep.subr.mxu1 %v70_v1  ;;  %v63_v8 = vld [vmem:[#allocation5 + $0x38] sm:$0xff]  ;;  %v62_v9 = vld [vmem:[#allocation5 + $0x30] sm:$0xff]  ;;  %v61_v10 = vld [vmem:[#allocation5 + $0x28] sm:$0xff]  ;;  %p417_p10 = scmp.ne.s32.totalorder %s239_s1, %s416_s21  ;;  %p422_p12 = scmp.lt.s32.totalorder %s416_s21, %s416_s21 }
  0x20   :  { %286 = vmatpush3.msra.mxu0 %v70_v1  ;;  %356 = vmatpush3.msra.mxu1 %v70_v1  ;;  %v60_v11 = vld [vmem:[#allocation5 + $0x20] sm:$0xff]  ;;  %v59_v12 = vld [vmem:[#allocation5 + $0x18] sm:$0xff]  ;;  %v58_v13 = vld [vmem:[#allocation5 + $0x10] sm:$0xff] }
  0x21   :  { %287 = vmatprep.subr.mxu0 %v69_v2  ;;  %341 = vmatprep.subr.mxu1 %v69_v2  ;;  %v57_v14 = vld [vmem:[#allocation5 + $0x8] sm:$0xff]  ;;  %v56_v15 = vld [vmem:[#allocation5] sm:$0xff]  ;;  %v42_v20 = vld [vmem:[#allocation2 + $0x10] sm:$0xff]  ;;  %p423_p13 = por %p422_p12, %p421_p11 }
  0x22   :  { %288 = vmatpush3.msra.mxu0 %v69_v2  ;;  %357 = vmatpush3.msra.mxu1 %v69_v2  ;;  %v40_v16 = vld [vmem:[#allocation2] sm:$0xff]  ;;  %v41_v18 = vld [vmem:[#allocation2 + $0x8] sm:$0xff]  ;;  %v50_v21 = vld [vmem:[#allocation2 + $0x50] sm:$0xff] }
  0x23   :  { %289 = vmatprep.subr.mxu0 %v68_v3  ;;  %342 = vmatprep.subr.mxu1 %v68_v3  ;;  %v48_v17 = vld [vmem:[#allocation2 + $0x40] sm:$0xff]  ;;  %v49_v19 = vld [vmem:[#allocation2 + $0x48] sm:$0xff]  ;;  %v43_v22 = vld [vmem:[#allocation2 + $0x18] sm:$0xff]  ;;  %p424_p0 = pnand %p423_p13, %p417_p10 }
  0x24   :  { %290 = vmatpush3.msra.mxu0 %v68_v3  ;;  %358 = vmatpush3.msra.mxu1 %v68_v3  ;;  %v51_v23 = vld [vmem:[#allocation2 + $0x58] sm:$0xff]  ;;  %v44_v24 = vld [vmem:[#allocation2 + $0x20] sm:$0xff]  ;;  %v45_v26 = vld [vmem:[#allocation2 + $0x28] sm:$0xff] }
  0x25   :  { %291 = vmatprep.subr.mxu0 %v67_v4  ;;  %343 = vmatprep.subr.mxu1 %v67_v4  ;;  %v52_v25 = vld [vmem:[#allocation2 + $0x60] sm:$0xff]  ;;  %v53_v27 = vld [vmem:[#allocation2 + $0x68] sm:$0xff]  ;;  %v46_v28 = vld [vmem:[#allocation2 + $0x30] sm:$0xff] }
  0x26   :  { %292 = vmatpush3.msra.mxu0 %v67_v4  ;;  %359 = vmatpush3.msra.mxu1 %v67_v4  ;;  %v54_v29 = vld [vmem:[#allocation2 + $0x70] sm:$0xff]  ;;  %v47_v30 = vld [vmem:[#allocation2 + $0x38] sm:$0xff] }
  0x27   :  { %293 = vmatprep.subr.mxu0 %v66_v5  ;;  %344 = vmatprep.subr.mxu1 %v66_v5  ;;  %v55_v31 = vld [vmem:[#allocation2 + $0x78] sm:$0xff] }
  0x28   :  { %294 = vmatpush3.msra.mxu0 %v66_v5  ;;  %360 = vmatpush3.msra.mxu1 %v66_v5 }
  0x29   :  { %295 = vmatprep.subr.mxu0 %v65_v6  ;;  %345 = vmatprep.subr.mxu1 %v65_v6 }
  0x2a   :  { %296 = vmatpush3.msra.mxu0 %v65_v6  ;;  %361 = vmatpush3.msra.mxu1 %v65_v6 }
  0x2b   :  { %297 = vmatprep.subr.mxu0 %v64_v7  ;;  %346 = vmatprep.subr.mxu1 %v64_v7 }
  0x2c   :  { %298 = vmatpush3.msra.mxu0 %v64_v7  ;;  %362 = vmatpush3.msra.mxu1 %v64_v7 }
  0x2d   :  { %299 = vmatprep.subr.mxu0 %v63_v8  ;;  %347 = vmatprep.subr.mxu1 %v63_v8 }
  0x2e   :  { %300 = vmatpush3.msra.mxu0 %v63_v8  ;;  %363 = vmatpush3.msra.mxu1 %v63_v8 }
  0x2f   :  { %301 = vmatprep.subr.mxu0 %v62_v9  ;;  %348 = vmatprep.subr.mxu1 %v62_v9 }
  0x30   :  { %302 = vmatpush3.msra.mxu0 %v62_v9  ;;  %364 = vmatpush3.msra.mxu1 %v62_v9 }
  0x31   :  { %303 = vmatprep.subr.mxu0 %v61_v10  ;;  %349 = vmatprep.subr.mxu1 %v61_v10 }
  0x32   :  { %304 = vmatpush3.msra.mxu0 %v61_v10  ;;  %365 = vmatpush3.msra.mxu1 %v61_v10 }
  0x33   :  { %305 = vmatprep.subr.mxu0 %v60_v11  ;;  %350 = vmatprep.subr.mxu1 %v60_v11 }
  0x34   :  { %306 = vmatpush3.msra.mxu0 %v60_v11  ;;  %366 = vmatpush3.msra.mxu1 %v60_v11 }
  0x35   :  { %307 = vmatprep.subr.mxu0 %v59_v12  ;;  %351 = vmatprep.subr.mxu1 %v59_v12 }
  0x36   :  { %308 = vmatpush3.msra.mxu0 %v59_v12  ;;  %367 = vmatpush3.msra.mxu1 %v59_v12 }
  0x37   :  { %309 = vmatprep.subr.mxu0 %v58_v13  ;;  %352 = vmatprep.subr.mxu1 %v58_v13 }
  0x38   :  { %310 = vmatpush3.msra.mxu0 %v58_v13  ;;  %368 = vmatpush3.msra.mxu1 %v58_v13 }
  0x39   :  { %311 = vmatprep.subr.mxu0 %v57_v14  ;;  %353 = vmatprep.subr.mxu1 %v57_v14 }
  0x3a   :  { %312 = vmatpush3.msra.mxu0 %v57_v14  ;;  %369 = vmatpush3.msra.mxu1 %v57_v14 }
  0x3b   :  { %313 = vmatprep.subr.mxu0 %v56_v15  ;;  %354 = vmatprep.subr.mxu1 %v56_v15 }
  0x3c   :  { %314 = vmatpush3.msra.mxu0 %v56_v15  ;;  %370 = vmatpush3.msra.mxu1 %v56_v15 }
  0x3d   :  { %315 = vmatprep.mubr.f32.mxu0 %v40_v16  ;;  %327 = vmatprep.mubr.f32.mxu1 %v48_v17 }
  0x3e   :  { %316 = vmatmul.mubr.f32.vlgmr.msra.gmra.mxu0 %v41_v18  ;;  %328 = vmatmul.mubr.f32.vlgmr.msra.gmra.mxu1 %v49_v19 }
  0x3f   :  { %318 = vmatprep.mubr.f32.mxu0 %v42_v20  ;;  %330 = vmatprep.mubr.f32.mxu1 %v50_v21 }
  0x42   :  { %319 = vmatmul.mubr.f32.gmra.mxu0 %v43_v22  ;;  %331 = vmatmul.mubr.f32.gmra.mxu1 %v51_v23 }
  0x43   :  { %321 = vmatprep.mubr.f32.mxu0 %v44_v24  ;;  %333 = vmatprep.mubr.f32.mxu1 %v52_v25 }
  0x46   :  { %322 = vmatmul.mubr.f32.gmra.mxu0 %v45_v26  ;;  %334 = vmatmul.mubr.f32.gmra.mxu1 %v53_v27 }
  0x47   :  { %324 = vmatprep.mubr.f32.mxu0 %v46_v28  ;;  %336 = vmatprep.mubr.f32.mxu1 %v54_v29 }
  0x4a   :  { %325 = vmatmul.mubr.f32.gmra.mxu0 %v47_v30  ;;  %337 = vmatmul.mubr.f32.gmra.mxu1 %v55_v31 }
  0xfe   :  { %v317_v32 = vpop.f32.mrf.mxu0  ;;  %v329_v33 = vpop.f32.mrf.mxu1 }
  0xff   :  { %218 = vst [vmem:[#allocation7 + $0x8] sm:$0xff] %v317_v32  ;;  %226 = vst [vmem:[#allocation7 + $0x48] sm:$0xff] %v329_v33 }
 0x100   :  { %v138_v34 = vpop.f32.mrf.mxu0  ;;  %v178_v35 = vpop.f32.mrf.mxu1 }
 0x101   :  { %217 = vst [vmem:[#allocation7] sm:$0xff] %v138_v34  ;;  %225 = vst [vmem:[#allocation7 + $0x40] sm:$0xff] %v178_v35 }
 0x102   :  { %v320_v36 = vpop.f32.mrf.mxu0  ;;  %v332_v37 = vpop.f32.mrf.mxu1 }
 0x103   :  { %220 = vst [vmem:[#allocation7 + $0x18] sm:$0xff] %v320_v36  ;;  %228 = vst [vmem:[#allocation7 + $0x58] sm:$0xff] %v332_v37 }
 0x104   :  { %v148_v38 = vpop.f32.mrf.mxu0  ;;  %v188_v39 = vpop.f32.mrf.mxu1 }
 0x105   :  { %219 = vst [vmem:[#allocation7 + $0x10] sm:$0xff] %v148_v38  ;;  %227 = vst [vmem:[#allocation7 + $0x50] sm:$0xff] %v188_v39 }
 0x106   :  { %v323_v40 = vpop.f32.mrf.mxu0  ;;  %v335_v41 = vpop.f32.mrf.mxu1 }
 0x107   :  { %222 = vst [vmem:[#allocation7 + $0x28] sm:$0xff] %v323_v40  ;;  %230 = vst [vmem:[#allocation7 + $0x68] sm:$0xff] %v335_v41 }
 0x108   :  { %v158_v42 = vpop.f32.mrf.mxu0  ;;  %v198_v43 = vpop.f32.mrf.mxu1 }
 0x109   :  { %221 = vst [vmem:[#allocation7 + $0x20] sm:$0xff] %v158_v42  ;;  %229 = vst [vmem:[#allocation7 + $0x60] sm:$0xff] %v198_v43 }
 0x10a   :  { %v326_v44 = vpop.f32.mrf.mxu0  ;;  %v338_v45 = vpop.f32.mrf.mxu1 }
 0x10b   :  { %224 = vst [vmem:[#allocation7 + $0x38] sm:$0xff] %v326_v44  ;;  %232 = vst [vmem:[#allocation7 + $0x78] sm:$0xff] %v338_v45 }
 0x10c   :  { %v168_v46 = vpop.f32.mrf.mxu0  ;;  %v208_v47 = vpop.f32.mrf.mxu1 }
 0x10d   :  { %223 = vst [vmem:[#allocation7 + $0x30] sm:$0xff] %v168_v46  ;;  %231 = vst [vmem:[#allocation7 + $0x70] sm:$0xff] %v208_v47 }
 0x10e   :  { %427 = shalt.err (!%p424_p0)
}
 0x10f   :  { %244 = dma.vmem_to_hbm [thread:$0]  %s239_s1, 2048, %s482_s2, [#allocation4], %s443_s12, %s443_s12, %s444_s13  }
 0x110   :  { %440 = dma.done.wait [#allocation4], 2048  }
 0x111   :  { %441 = vsyncadd [#allocation4], 4294965248 }
 0x112   :  { %248 = vsyncpa [#allocation3], 1 }
 0x113   :  { %249 = vsyncpa [#allocation6], 1 }
 0x114   :  { %250 = vsyncpa [#allocation4], 1 }

</bundles_post_ra>
